<compile_context>
chip_gen: v5e
topology: v5e:2x2
jax: 0.10.0
libtpu: 0.0.40
codegen_flags: <defaults>
</compile_context>

<pallas_src>
import jax
import jax.numpy as jnp
from jax.experimental import pallas as pl
from jax.experimental.pallas import tpu as pltpu

# (in_dim, out_dim) of the 8 raw Linear layers, in order (fc1..fc4, 2 each).
_RAW_LAYER_DIMS = [
    (32, 32), (32, 64),      # fc1 = MLP(32, 64, 32, 2)
    (64, 64), (64, 128),     # fc2 = MLP(64, 128, 64, 2)
    (128, 32), (32, 64),     # fc3 = MLP(128, 64, 32, 2)
    (64, 16), (16, 32),      # fc4 = MLP(64, 32, 16, 2)
]
_NUM_RAW_LAYERS = len(_RAW_LAYER_DIMS)
_NUM_FUSED = _NUM_RAW_LAYERS // 2          # 4 fused layers: 32->64->128->64->32
_D_IN = 32


def _round_up(x, m):
    return (x + m - 1) // m * m


def _conten_encoder_kernel(x_ref, w1, b1, w2, b2, w3, b3, w4, b4, o_ref):
    """One batch tile through the fused 4-layer ContenEncoder.

    x_ref : [tile_b, 32] f32     input tile
    w_i   : [d_in_i, d_out_i] bf16  fused per-MLP weight (VMEM-resident)
    b_i   : [1, d_out_i]      f32   fused per-MLP bias
    o_ref : [tile_b, 32] f32     relu-MLP stack output + residual input
    """
    x = x_ref[...]
    h = x
    for w_ref, b_ref in ((w1, b1), (w2, b2), (w3, b3), (w4, b4)):
        w = w_ref[...]
        h = jnp.dot(h.astype(w.dtype), w, preferred_element_type=jnp.float32)
        h = jnp.maximum(h + b_ref[...], 0.0)      # ReLU after every fused MLP
    o_ref[...] = (h + x).astype(o_ref.dtype)      # residual; resblocks is None


def fuse_params(params, compute_dtype=jnp.bfloat16):
    """Compose each MLP's two activation-free Linears into one layer (in f32)."""
    fused = []
    for blk in range(_NUM_FUSED):
        wa = params[f"w{2 * blk + 1}"]            # [din, hid]
        ba = params[f"b{2 * blk + 1}"]            # [1, hid]
        wb = params[f"w{2 * blk + 2}"]            # [hid, dout]
        bb = params[f"b{2 * blk + 2}"]            # [1, dout]
        w = jnp.dot(wa, wb, precision=jax.lax.Precision.HIGHEST,
                    preferred_element_type=jnp.float32)
        b = jnp.dot(ba, wb, precision=jax.lax.Precision.HIGHEST,
                    preferred_element_type=jnp.float32) + bb
        fused.append((w.astype(compute_dtype), b.astype(jnp.float32)))
    return fused


def conten_encoder_forward(x, params, *, tile_b=1024,
                           compute_dtype=jnp.bfloat16):
    """x: [B, 32] float32. params: dict of (w_i [in,out], b_i [1,out]), i=1..8."""
    B, d_in = x.shape
    assert d_in == _D_IN

    fused = fuse_params(params, compute_dtype)

    # Batch tiling: tile_b multiple of 8; for large batches ensure >= 2 grid
    # steps so dimension_semantics=("parallel",) can shard across v7x's 2 TCs.
    b_ceil = _round_up(B, 8)
    tile = min(tile_b, b_ceil)
    if b_ceil >= 1024:
        tile = min(tile, _round_up(pl.cdiv(b_ceil, 2), 8))
    tile = max(tile, 8)
    b_pad = _round_up(b_ceil, tile)

    if b_pad != B:
        x_in = jnp.zeros((b_pad, d_in), x.dtype).at[:B].set(x)
    else:
        x_in = x

    def const_spec(shape):
        return pl.BlockSpec(shape, lambda i: (0,) * len(shape))

    param_args, param_specs = [], []
    for w, b in fused:
        param_args += [w, b]
        param_specs += [const_spec(w.shape), const_spec(b.shape)]

    grid = (b_pad // tile,)
    out = pl.pallas_call(
        _conten_encoder_kernel,
        out_shape=jax.ShapeDtypeStruct((b_pad, d_in), x.dtype),
        grid=grid,
        in_specs=[
            # x: one (tile, 32) tile per grid step -> pipelined DMA. Last dim
            # equals the full array dim, so the 32-lane block is legal.
            pl.BlockSpec((tile, d_in), lambda i: (i, 0)),
            # Fused weights / biases: constant index_map -> DMA'd once,
            # VMEM-resident across all grid steps.
            *param_specs,
        ],
        out_specs=pl.BlockSpec((tile, d_in), lambda i: (i, 0)),
        compiler_params=pltpu.CompilerParams(
            dimension_semantics=("parallel",),
            vmem_limit_bytes=32 * 1024 * 1024,
        ),
    )(x_in, *param_args)
    return out[:B] if b_pad != B else out


def init_params(key):
    """Deterministic synthetic parameters. Weights stored as [in, out]
    (= PyTorch nn.Linear.weight.T); biases as [1, out]."""
    params = {}
    for i, (din, dout) in enumerate(_RAW_LAYER_DIMS):
        key, wk, bk = jax.random.split(key, 3)
        scale = 1.0 / jnp.sqrt(jnp.float32(din))
        params[f"w{i + 1}"] = jax.random.normal(wk, (din, dout), jnp.float32) * scale
        params[f"b{i + 1}"] = jax.random.uniform(bk, (1, dout), jnp.float32,
                                                 -scale, scale)
    return params


def reference_forward(x, params):
    """Faithful plain-JAX reference: 8 f32 Linears, ReLU after every 2nd, +x."""
    h = x
    for i in range(_NUM_RAW_LAYERS):
        w = params[f"w{i + 1}"]
        b = params[f"b{i + 1}"]
        h = jnp.dot(h, w, precision=jax.lax.Precision.HIGHEST,
                    preferred_element_type=jnp.float32) + b
        if i % 2 == 1:
            h = jnp.maximum(h, 0.0)
    return h + x


def reference_forward_fused(x, params, compute_dtype=jnp.bfloat16):
    """Plain-JAX reference with the kernel's exact numerics
    (f32-composed fused layers, bf16 matmul inputs, f32 accumulation)."""
    h = x
    for w, b in fuse_params(params, compute_dtype):
        h = jnp.dot(h.astype(compute_dtype), w,
                    preferred_element_type=jnp.float32) + b
        h = jnp.maximum(h, 0.0)
    return h + x


if __name__ == "__main__":
    key = jax.random.PRNGKey(0)
    key, pkey, xkey = jax.random.split(key, 3)

    batch, d_in = 8, 32
    params = init_params(pkey)
    x = jax.random.normal(xkey, (batch, d_in), jnp.float32)

    out = conten_encoder_forward(x, params)
    out = jax.block_until_ready(out)

    ref_match = reference_forward_fused(x, params)   # same bf16/f32 numerics
    ref_f32 = reference_forward(x, params)           # faithful f32 math

    assert out.shape == (batch, d_in)
    assert jnp.allclose(out, ref_match, atol=2e-3, rtol=2e-3), \
        float(jnp.max(jnp.abs(out - ref_match)))
    assert jnp.allclose(out, ref_f32, atol=1e-1, rtol=1e-1), \
        float(jnp.max(jnp.abs(out - ref_f32)))

    print("KERNEL_OK")
</pallas_src>

<mosaic_0001>
module attributes {stable_mosaic.version = 11 : i64} {
  func.func @_conten_encoder_kernel(%arg0: i32, %arg1: memref<8x32xf32, #tpu.memory_space<vmem>>, %arg2: memref<32x64xbf16, #tpu.memory_space<vmem>>, %arg3: memref<1x64xf32, #tpu.memory_space<vmem>>, %arg4: memref<64x128xbf16, #tpu.memory_space<vmem>>, %arg5: memref<1x128xf32, #tpu.memory_space<vmem>>, %arg6: memref<128x64xbf16, #tpu.memory_space<vmem>>, %arg7: memref<1x64xf32, #tpu.memory_space<vmem>>, %arg8: memref<64x32xbf16, #tpu.memory_space<vmem>>, %arg9: memref<1x32xf32, #tpu.memory_space<vmem>>, %arg10: memref<8x32xf32, #tpu.memory_space<vmem>>) attributes {dimension_semantics = [#tpu.dimension_semantics<parallel>], iteration_bounds = array<i64: 1>, scalar_prefetch = 0 : i64, scratch_operands = 0 : i64, tpu.core_type = #tpu.core_type<tc>, window_params = [{transform_indices = @transform_0, window_bounds = array<i64: 8, 32>}, {pipeline_mode = #tpu.pipeline_mode<synchronous>, transform_indices = @transform_1, window_bounds = array<i64: 32, 64>}, {pipeline_mode = #tpu.pipeline_mode<synchronous>, transform_indices = @transform_2, window_bounds = array<i64: 1, 64>}, {pipeline_mode = #tpu.pipeline_mode<synchronous>, transform_indices = @transform_3, window_bounds = array<i64: 64, 128>}, {pipeline_mode = #tpu.pipeline_mode<synchronous>, transform_indices = @transform_4, window_bounds = array<i64: 1, 128>}, {pipeline_mode = #tpu.pipeline_mode<synchronous>, transform_indices = @transform_5, window_bounds = array<i64: 128, 64>}, {pipeline_mode = #tpu.pipeline_mode<synchronous>, transform_indices = @transform_6, window_bounds = array<i64: 1, 64>}, {pipeline_mode = #tpu.pipeline_mode<synchronous>, transform_indices = @transform_7, window_bounds = array<i64: 64, 32>}, {pipeline_mode = #tpu.pipeline_mode<synchronous>, transform_indices = @transform_8, window_bounds = array<i64: 1, 32>}, {transform_indices = @transform_9, window_bounds = array<i64: 8, 32>}]} {
    %c0 = arith.constant 0 : index
    %c0_0 = arith.constant 0 : index
    %0 = vector.load %arg1[%c0, %c0_0] : memref<8x32xf32, #tpu.memory_space<vmem>>, vector<8x32xf32>
    %c0_1 = arith.constant 0 : index
    %c0_2 = arith.constant 0 : index
    %1 = vector.load %arg2[%c0_1, %c0_2] : memref<32x64xbf16, #tpu.memory_space<vmem>>, vector<32x64xbf16>
    %2 = arith.truncf %0 : vector<8x32xf32> to vector<8x32xbf16>
    %cst = arith.constant dense<0.000000e+00> : vector<8x64xf32>
    %3 = tpu.matmul %2, %1, %cst {dimension_numbers = #tpu.dot_dimension_numbers<[1], [0], [0], [1], [0, 0, 1, 1], [], []>} : vector<8x32xbf16>, vector<32x64xbf16>, vector<8x64xf32> -> vector<8x64xf32>
    %c0_3 = arith.constant 0 : index
    %c0_4 = arith.constant 0 : index
    %4 = vector.load %arg3[%c0_3, %c0_4] : memref<1x64xf32, #tpu.memory_space<vmem>>, vector<1x64xf32>
    %5 = vector.broadcast %4 : vector<1x64xf32> to vector<8x64xf32>
    %6 = arith.addf %3, %5 : vector<8x64xf32>
    %cst_5 = arith.constant 0.000000e+00 : f32
    %7 = vector.broadcast %cst_5 : f32 to vector<8x64xf32>
    %8 = arith.maximumf %6, %7 : vector<8x64xf32>
    %c0_6 = arith.constant 0 : index
    %c0_7 = arith.constant 0 : index
    %9 = vector.load %arg4[%c0_6, %c0_7] : memref<64x128xbf16, #tpu.memory_space<vmem>>, vector<64x128xbf16>
    %10 = arith.truncf %8 : vector<8x64xf32> to vector<8x64xbf16>
    %cst_8 = arith.constant dense<0.000000e+00> : vector<8x128xf32>
    %11 = tpu.matmul %10, %9, %cst_8 {dimension_numbers = #tpu.dot_dimension_numbers<[1], [0], [0], [1], [0, 0, 1, 1], [], []>} : vector<8x64xbf16>, vector<64x128xbf16>, vector<8x128xf32> -> vector<8x128xf32>
    %c0_9 = arith.constant 0 : index
    %c0_10 = arith.constant 0 : index
    %12 = vector.load %arg5[%c0_9, %c0_10] : memref<1x128xf32, #tpu.memory_space<vmem>>, vector<1x128xf32>
    %13 = vector.broadcast %12 : vector<1x128xf32> to vector<8x128xf32>
    %14 = arith.addf %11, %13 : vector<8x128xf32>
    %cst_11 = arith.constant 0.000000e+00 : f32
    %15 = vector.broadcast %cst_11 : f32 to vector<8x128xf32>
    %16 = arith.maximumf %14, %15 : vector<8x128xf32>
    %c0_12 = arith.constant 0 : index
    %c0_13 = arith.constant 0 : index
    %17 = vector.load %arg6[%c0_12, %c0_13] : memref<128x64xbf16, #tpu.memory_space<vmem>>, vector<128x64xbf16>
    %18 = arith.truncf %16 : vector<8x128xf32> to vector<8x128xbf16>
    %cst_14 = arith.constant dense<0.000000e+00> : vector<8x64xf32>
    %19 = tpu.matmul %18, %17, %cst_14 {dimension_numbers = #tpu.dot_dimension_numbers<[1], [0], [0], [1], [0, 0, 1, 1], [], []>} : vector<8x128xbf16>, vector<128x64xbf16>, vector<8x64xf32> -> vector<8x64xf32>
    %c0_15 = arith.constant 0 : index
    %c0_16 = arith.constant 0 : index
    %20 = vector.load %arg7[%c0_15, %c0_16] : memref<1x64xf32, #tpu.memory_space<vmem>>, vector<1x64xf32>
    %21 = vector.broadcast %20 : vector<1x64xf32> to vector<8x64xf32>
    %22 = arith.addf %19, %21 : vector<8x64xf32>
    %cst_17 = arith.constant 0.000000e+00 : f32
    %23 = vector.broadcast %cst_17 : f32 to vector<8x64xf32>
    %24 = arith.maximumf %22, %23 : vector<8x64xf32>
    %c0_18 = arith.constant 0 : index
    %c0_19 = arith.constant 0 : index
    %25 = vector.load %arg8[%c0_18, %c0_19] : memref<64x32xbf16, #tpu.memory_space<vmem>>, vector<64x32xbf16>
    %26 = arith.truncf %24 : vector<8x64xf32> to vector<8x64xbf16>
    %cst_20 = arith.constant dense<0.000000e+00> : vector<8x32xf32>
    %27 = tpu.matmul %26, %25, %cst_20 {dimension_numbers = #tpu.dot_dimension_numbers<[1], [0], [0], [1], [0, 0, 1, 1], [], []>} : vector<8x64xbf16>, vector<64x32xbf16>, vector<8x32xf32> -> vector<8x32xf32>
    %c0_21 = arith.constant 0 : index
    %c0_22 = arith.constant 0 : index
    %28 = vector.load %arg9[%c0_21, %c0_22] : memref<1x32xf32, #tpu.memory_space<vmem>>, vector<1x32xf32>
    %29 = vector.broadcast %28 : vector<1x32xf32> to vector<8x32xf32>
    %30 = arith.addf %27, %29 : vector<8x32xf32>
    %cst_23 = arith.constant 0.000000e+00 : f32
    %31 = vector.broadcast %cst_23 : f32 to vector<8x32xf32>
    %32 = arith.maximumf %30, %31 : vector<8x32xf32>
    %33 = arith.addf %32, %0 : vector<8x32xf32>
    %c0_24 = arith.constant 0 : index
    %c0_25 = arith.constant 0 : index
    %34 = vector.load %arg10[%c0_24, %c0_25] : memref<8x32xf32, #tpu.memory_space<vmem>>, vector<8x32xf32>
    tpu.vector_store %arg10[%c0_24, %c0_25], %33 {strides = array<i32>} : memref<8x32xf32, #tpu.memory_space<vmem>>, vector<8x32xf32>,
    return
  }
  func.func @transform_0(%arg0: i32) -> (i32, i32) {
    %c0_i32 = arith.constant 0 : i32
    %c0_i32_0 = arith.constant 0 : i32
    return %arg0, %c0_i32 : i32, i32
  }
  func.func @transform_1(%arg0: i32) -> (i32, i32) {
    %c0_i32 = arith.constant 0 : i32
    %c0_i32_0 = arith.constant 0 : i32
    %c0_i32_1 = arith.constant 0 : i32
    return %c0_i32, %c0_i32_0 : i32, i32
  }
  func.func @transform_2(%arg0: i32) -> (i32, i32) {
    %c0_i32 = arith.constant 0 : i32
    %c0_i32_0 = arith.constant 0 : i32
    %c0_i32_1 = arith.constant 0 : i32
    return %c0_i32, %c0_i32_0 : i32, i32
  }
  func.func @transform_3(%arg0: i32) -> (i32, i32) {
    %c0_i32 = arith.constant 0 : i32
    %c0_i32_0 = arith.constant 0 : i32
    %c0_i32_1 = arith.constant 0 : i32
    return %c0_i32, %c0_i32_0 : i32, i32
  }
  func.func @transform_4(%arg0: i32) -> (i32, i32) {
    %c0_i32 = arith.constant 0 : i32
    %c0_i32_0 = arith.constant 0 : i32
    %c0_i32_1 = arith.constant 0 : i32
    return %c0_i32, %c0_i32_0 : i32, i32
  }
  func.func @transform_5(%arg0: i32) -> (i32, i32) {
    %c0_i32 = arith.constant 0 : i32
    %c0_i32_0 = arith.constant 0 : i32
    %c0_i32_1 = arith.constant 0 : i32
    return %c0_i32, %c0_i32_0 : i32, i32
  }
  func.func @transform_6(%arg0: i32) -> (i32, i32) {
    %c0_i32 = arith.constant 0 : i32
    %c0_i32_0 = arith.constant 0 : i32
    %c0_i32_1 = arith.constant 0 : i32
    return %c0_i32, %c0_i32_0 : i32, i32
  }
  func.func @transform_7(%arg0: i32) -> (i32, i32) {
    %c0_i32 = arith.constant 0 : i32
    %c0_i32_0 = arith.constant 0 : i32
    %c0_i32_1 = arith.constant 0 : i32
    return %c0_i32, %c0_i32_0 : i32, i32
  }
  func.func @transform_8(%arg0: i32) -> (i32, i32) {
    %c0_i32 = arith.constant 0 : i32
    %c0_i32_0 = arith.constant 0 : i32
    %c0_i32_1 = arith.constant 0 : i32
    return %c0_i32, %c0_i32_0 : i32, i32
  }
  func.func @transform_9(%arg0: i32) -> (i32, i32) {
    %c0_i32 = arith.constant 0 : i32
    %c0_i32_0 = arith.constant 0 : i32
    return %arg0, %c0_i32 : i32, i32
  }
}

</mosaic_0001>

<bundles_post_ra>
// kernel: tpu_custom_call.1
= control target key start
LH: loop header
LB: loop body
LE: loop exit
PB: predicated region body
PF: predicated region fallthrough
CT: control target
= control target key end

     0   :  { %s540_s0 = inlined_call_operand.vmem [shape: f32[8,32], index: 0, kind: input, shape index: {}]   ;;  %s541_s1 = inlined_call_operand.vmem [shape: bf16[32,64], index: 1, kind: input, shape index: {}]   ;;  %s542_s2 = inlined_call_operand.vmem [shape: f32[1,64], index: 2, kind: input, shape index: {}]   ;;  %s543_s3 = inlined_call_operand.vmem [shape: bf16[64,128], index: 3, kind: input, shape index: {}]   ;;  %s544_s4 = inlined_call_operand.vmem [shape: f32[1,128], index: 4, kind: input, shape index: {}]   ;;  %s545_s5 = inlined_call_operand.vmem [shape: bf16[128,64], index: 5, kind: input, shape index: {}]   ;;  %s546_s6 = inlined_call_operand.vmem [shape: f32[1,64], index: 6, kind: input, shape index: {}]   ;;  %s547_s7 = inlined_call_operand.vmem [shape: bf16[64,32], index: 7, kind: input, shape index: {}]   ;;  %s548_s8 = inlined_call_operand.vmem [shape: f32[1,32], index: 8, kind: input, shape index: {}]   ;;  %s549_s9 = inlined_call_operand.hbm [shape: f32[8,32], index: 9, kind: output, shape index: {}]  }
   0x1   :  { %v360_v0 = vld [vmem:[%s541_s1 + $0x8] sm:$0xff]  ;;  %v359_v1 = vld [vmem:[%s541_s1] sm:$0xff]  ;;  %v364_v2 = vld [vmem:[%s543_s3 + $0x18] sm:$0xff] }
   0x2   :  { %66 = vmatpush.bf16.msra.mxu0 %v360_v0  ;;  %v471_v3 = vld [vmem:[%s540_s0] sm:$0xff]  ;;  %119 = vmatpush.bf16.msra.mxu1 %v364_v2  ;;  %v363_v4 = vld [vmem:[%s543_s3 + $0x10] sm:$0xff] }
   0x3   :  { %14 = vsyncpa [#allocation3], 0  ;;  %v39_v5 = vpack.c.bf16 %v471_v3, %v471_v3  ;;  %vm56_vm0 = vcmask 261120   ;;  %v362_v6 = vld [vmem:[%s543_s3 + $0x8] sm:$0xff]  ;;  %v361_v7 = vld [vmem:[%s543_s3] sm:$0xff]  ;;  %vm111_vm1 = vcmask 523264  }
   0x4   :  { %v372_v8 = vld [vmem:[%s545_s5 + $0x38] sm:$0xff]  ;;  %v371_v9 = vld [vmem:[%s545_s5 + $0x30] sm:$0xff]  ;;  %v370_v10 = vld [vmem:[%s545_s5 + $0x28] sm:$0xff]  ;;  %s408_s26 = smov [#allocation2]   ;;  %s275_s3 = sshll.u32 %s549_s9, 4  ;;  %s276_s3 = int_to_ptr.hbm [resolvable:$true] %s275_s3 }
   0x5   :  { %198 = vmatpush.bf16.msra.mxu2 %v372_v8  ;;  %v369_v11 = vld [vmem:[%s545_s5 + $0x20] sm:$0xff]  ;;  %v368_v12 = vld [vmem:[%s545_s5 + $0x18] sm:$0xff]  ;;  %v367_v13 = vld [vmem:[%s545_s5 + $0x10] sm:$0xff] }
   0x6   :  { %67 = vmatpush.bf16.msra.mxu0 %v359_v1  ;;  %120 = vmatpush.bf16.msra.mxu1 %v363_v4  ;;  %v378_v14 = vld [vmem:[%s542_s2] ss:$0 sm:$0xff]  ;;  %v366_v20 = vld [vmem:[%s545_s5 + $0x8] sm:$0xff]  ;;  %v376_v22 = vld [vmem:[%s547_s7 + $0x18] sm:$0xff] }
   0x7   :  { %v365_v21 = vld [vmem:[%s545_s5] sm:$0xff]  ;;  %256 = vmatpush.bf16.msra.mxu3 %v376_v22  ;;  %v375_v23 = vld [vmem:[%s547_s7 + $0x10] sm:$0xff]  ;;  %v374_v30 = vld [vmem:[%s547_s7 + $0x8] sm:$0xff] }
   0x8   :  { %v379_v24 = vld [vmem:[%s544_s4] ss:$0 sm:$0xff] }
   0x9   :  { %292 = vmatmul.msk.bf16.vlgmr.msra.gmra.mxu0 %vm56_vm0, %v39_v5  ;;  %199 = vmatpush.bf16.msra.mxu2 %v371_v9  ;;  %v373_v31 = vld [vmem:[%s547_s7] sm:$0xff]  ;;  %s273_s7 = sshll.u32 %s408_s26, 4  ;;  %s274_s7 = int_to_ptr.vmem [resolvable:$true] %s273_s7 }
   0xa   :  { %121 = vmatpush.bf16.msra.mxu1 %v362_v6  ;;  %v380_v32 = vld [vmem:[%s546_s6] ss:$0 sm:$0xff] }
   0xb   :  { %257 = vmatpush.bf16.msra.mxu3 %v375_v23  ;;  %v381_v38 = vld [vmem:[%s548_s8] ss:$0 sm:$0xff] }
   0xd   :  { %200 = vmatpush.bf16.msra.mxu2 %v370_v10 }
   0xe   :  { %122 = vmatpush.bf16.msra.mxu1 %v361_v7 }
   0xf   :  { %258 = vmatpush.bf16.msra.mxu3 %v374_v30 }
  0x11   :  { %201 = vmatpush.bf16.msra.mxu2 %v369_v11 }
  0x13   :  { %259 = vmatpush.bf16.msra.mxu3 %v373_v31 }
  0x15   :  { %202 = vmatpush.bf16.msra.mxu2 %v368_v12 }
  0x19   :  { %203 = vmatpush.bf16.msra.mxu2 %v367_v13 }
  0x1d   :  { %204 = vmatpush.bf16.msra.mxu2 %v366_v20 }
  0x21   :  { %205 = vmatpush.bf16.msra.mxu2 %v365_v21 }
  0x86   :  { %v69_v15 = vpop.f32.mrf.mxu0 }
  0x87   :  { %v70_v16 = vadd.f32 %v378_v14, %v69_v15 }
  0x89   :  { %v73_v17 = vmax.f32 %v70_v16, 0.0 }
  0x8b   :  { %v82_v18 = vpack.c.bf16 %v73_v17, %v73_v17 }
  0x8d   :  { %309 = vmatmul.msk.bf16.vlgmr.msra.gmra.mxu1 %vm111_vm1, %v82_v18 }
  0x8e   :  { %v71_v19 = vpop.f32.mrf.mxu0 }
 0x10a   :  { %v124_v25 = vpop.f32.mrf.mxu1 }
 0x10b   :  { %v125_v26 = vadd.f32 %v379_v24, %v124_v25 }
 0x10d   :  { %v128_v27 = vmax.f32 %v125_v26, 0.0 }
 0x10f   :  { %v145_v28 = vpack.c.bf16 %v128_v27, %v128_v27 }
 0x111   :  { %206 = vmatmul.bf16.vlgmr.msra.gmra.mxu2 %v145_v28 }
 0x112   :  { %v126_v29 = vpop.f32.mrf.mxu1 }
 0x194   :  { %v207_v33 = vpop.f32.mrf.mxu2 }
 0x195   :  { %v208_v34 = vadd.f32 %v380_v32, %v207_v33 }
 0x197   :  { %v211_v35 = vmax.f32 %v208_v34, 0.0 }
 0x199   :  { %v220_v36 = vpack.c.bf16 %v211_v35, %v211_v35 }
 0x19b   :  { %358 = vmatmul.msk.bf16.vlgmr.msra.gmra.mxu3 %vm111_vm1, %v220_v36 }
 0x19c   :  { %v209_v37 = vpop.f32.mrf.mxu2 }
 0x21e   :  { %v261_v39 = vpop.f32.mrf.mxu3 }
 0x21f   :  { %v262_v40 = vadd.f32 %v381_v38, %v261_v39 }
 0x221   :  { %v265_v41 = vmax.f32 %v262_v40, 0.0 }
 0x223   :  { %v266_v42 = vadd.f32 %v265_v41, %v471_v3 }
 0x225   :  { %267 = vst.msk [vmem:[#allocation2] sm:$0xff] %vm56_vm0, %v266_v42 }
 0x226   :  { %v263_v43 = vpop.f32.mrf.mxu3  ;;  %278 = dma.vmem_to_hbm [thread:$0]  %s274_s7, 128, %s276_s3, [#allocation3]  }
 0x227   :  { %406 = dma.done.wait [#allocation3], 128  }
 0x228   :  { %407 = vsyncadd [#allocation3], 4294967168 }
 0x229   :  { %283 = vsyncpa [#allocation3], 1 }

</bundles_post_ra>
